<compile_context>
chip_gen: v7x
topology: tpu7x:2x2x1
jax: 0.10.0
libtpu: 0.0.40
codegen_flags: <defaults>
</compile_context>

<pallas_src>
import jax
import jax.numpy as jnp
from jax.experimental import pallas as pl
from jax.experimental.pallas import tpu as pltpu


def _round_up(x, m):
    return (x + m - 1) // m * m


def _bidir_attn_kernel(v1_ref, v2_ref, m1r_ref, m1c_ref, m2r_ref, m2c_ref,
                       av1_ref, av2_ref):
    """Fused bidirectional attention for a tile of batch elements.

    v1_ref  : (tb, L1, Dp) bf16   left sequence  (D zero-padded to Dp)
    v2_ref  : (tb, L2, Dp) bf16   right sequence
    m1r_ref : (tb, 1, L1)  int8   v1_mask, row orientation
    m1c_ref : (tb, L1, 1)  int8   v1_mask, column orientation
    m2r_ref : (tb, 1, L2)  int8   v2_mask, row orientation
    m2c_ref : (tb, L2, 1)  int8   v2_mask, column orientation
    av1_ref : (tb, L1, Dp) f32    attended_v1
    av2_ref : (tb, L2, Dp) f32    attended_v2
    """
    v1 = v1_ref[...]
    v2 = v2_ref[...]
    fill = jnp.float32(-1e-07)  # MatchZoo uses -1e-07 (a near no-op), not -1e7.

    # ---- Branch A: softmax over L2 (dim=2)  ->  attended_v1 -----------------
    # sim[b, l, m] = <v1[b, l, :], v2[b, m, :]>   (MXU, f32 accumulation)
    sim = jnp.einsum('bld,bmd->blm', v1, v2,
                     preferred_element_type=jnp.float32)
    s2 = jnp.where(m2r_ref[...] != 0, fill, sim)
    e2 = jnp.exp(s2 - jnp.max(s2, axis=2, keepdims=True))
    inv2 = pl.reciprocal(jnp.sum(e2, axis=2, keepdims=True), approx=True)
    att1 = jnp.einsum('blm,bmd->bld', e2.astype(v2.dtype), v2,
                      preferred_element_type=jnp.float32) * inv2
    av1_ref[...] = jnp.where(m1c_ref[...] != 0, 0.0, att1).astype(av1_ref.dtype)

    # ---- Branch B: softmax over L1 (dim=1)  ->  attended_v2 -----------------
    # Work in the transposed orientation (recompute sim^T on the nearly idle
    # MXU) so the reduction stays on the lane axis and attended_v2 is a plain
    # [L2,L1] x [L1,D] matmul -- no attention-matrix transpose on the XLU.
    simT = jnp.einsum('bmd,bld->bml', v2, v1,
                      preferred_element_type=jnp.float32)
    s1 = jnp.where(m1r_ref[...] != 0, fill, simT)
    e1 = jnp.exp(s1 - jnp.max(s1, axis=2, keepdims=True))
    inv1 = pl.reciprocal(jnp.sum(e1, axis=2, keepdims=True), approx=True)
    att2 = jnp.einsum('bml,bld->bmd', e1.astype(v1.dtype), v1,
                      preferred_element_type=jnp.float32) * inv1
    av2_ref[...] = jnp.where(m2c_ref[...] != 0, 0.0, att2).astype(av2_ref.dtype)


def _per_element_vmem_bytes(L1, L2, Dp, in_itemsize, out_itemsize):
    """Rough per-batch-element VMEM footprint (double-buffered I/O + live intermediates)."""
    io = (L1 + L2) * Dp * (in_itemsize + out_itemsize)        # v1/v2 + av1/av2
    io += 2 * (_round_up(L1, 32) + _round_up(L2, 32)) * 128   # int8 masks (tile-padded)
    interm = 3 * L1 * L2 * 4 + 2 * max(L1, L2) * Dp * 4       # sim/e + un-stored results
    return 2 * io + interm                                    # 2x: pipeline double-buffering


def _auto_batch_tile(B, per_elem_bytes, budget_bytes):
    cap = max(1, budget_bytes // max(per_elem_bytes, 1))
    if B >= 2:
        cap = min(cap, max(1, B // 2))  # keep >= 2 grid steps (v7x has 2 TensorCores)
    cap = int(min(cap, B))
    tb = 1
    for d in range(1, cap + 1):         # largest divisor of B that fits the budget
        if B % d == 0:
            tb = d
    return tb


def bidirectional_attention(v1, v1_mask, v2, v2_mask, *,
                            matmul_dtype=jnp.bfloat16,
                            batch_tile=None,
                            vmem_budget_bytes=12 * 2 ** 20):
    """v1: [B, L1, D]; v1_mask: bool [B, L1] (True = padded);
    v2: [B, L2, D]; v2_mask: bool [B, L2].
    Returns (attended_v1 [B, L1, D] f32, attended_v2 [B, L2, D] f32)."""
    B, L1, D = v1.shape
    B2, L2, D2 = v2.shape
    assert B2 == B and D2 == D

    # Lane-dense operands / stores: zero-pad D up to a multiple of 128.
    Dp = _round_up(D, 128)
    pad = ((0, 0), (0, 0), (0, Dp - D))
    v1p = jnp.pad(v1, pad).astype(matmul_dtype)
    v2p = jnp.pad(v2, pad).astype(matmul_dtype)

    # Pre-orient masks in the wrapper (int8) so the kernel never relayouts.
    m1 = v1_mask.astype(jnp.int8)
    m2 = v2_mask.astype(jnp.int8)
    m1r = m1.reshape(B, 1, L1)
    m1c = m1.reshape(B, L1, 1)
    m2r = m2.reshape(B, 1, L2)
    m2c = m2.reshape(B, L2, 1)

    per_elem = _per_element_vmem_bytes(L1, L2, Dp,
                                       jnp.dtype(matmul_dtype).itemsize, 4)
    if batch_tile is None:
        tb = _auto_batch_tile(B, per_elem, vmem_budget_bytes)
    else:
        tb = batch_tile if (batch_tile > 0 and B % batch_tile == 0) else 1
    # TODO(synk): for very long L1/L2 (per-element footprint beyond the VMEM
    # budget) a flash-style two-pass restructuring is needed; here tb simply
    # degrades to 1.

    try:
        phys_vmem = pltpu.get_tpu_info().vmem_capacity_bytes
    except Exception:
        phys_vmem = 64 * 2 ** 20   # v7x per-core size: safe lower bound
    vmem_limit = int(min(phys_vmem * 3 // 4,
                         max(32 * 2 ** 20, 2 * tb * per_elem)))

    av1, av2 = pl.pallas_call(
        _bidir_attn_kernel,
        out_shape=(
            jax.ShapeDtypeStruct((B, L1, Dp), jnp.float32),
            jax.ShapeDtypeStruct((B, L2, Dp), jnp.float32),
        ),
        grid=(B // tb,),
        in_specs=[
            pl.BlockSpec((tb, L1, Dp), lambda b: (b, 0, 0)),
            pl.BlockSpec((tb, L2, Dp), lambda b: (b, 0, 0)),
            pl.BlockSpec((tb, 1, L1), lambda b: (b, 0, 0)),
            pl.BlockSpec((tb, L1, 1), lambda b: (b, 0, 0)),
            pl.BlockSpec((tb, 1, L2), lambda b: (b, 0, 0)),
            pl.BlockSpec((tb, L2, 1), lambda b: (b, 0, 0)),
        ],
        out_specs=(
            pl.BlockSpec((tb, L1, Dp), lambda b: (b, 0, 0)),
            pl.BlockSpec((tb, L2, Dp), lambda b: (b, 0, 0)),
        ),
        compiler_params=pltpu.CompilerParams(
            dimension_semantics=("parallel",),
            vmem_limit_bytes=vmem_limit,
        ),
    )(v1p, v2p, m1r, m1c, m2r, m2c)

    # Strip the D padding (pad columns are exactly zero).
    return av1[:, :, :D], av2[:, :, :D]


def reference_forward(v1, v1_mask, v2, v2_mask):
    """Pure-JAX f32 reference mirroring the PyTorch module exactly."""
    fill = jnp.float32(-1e-07)
    sim = jnp.einsum('bld,bmd->blm', v1, v2)
    sim1 = jnp.where(v1_mask[:, :, None], fill, sim)
    sim2 = jnp.where(v2_mask[:, None, :], fill, sim)
    v2_v1_attn = jax.nn.softmax(sim1, axis=1)
    v1_v2_attn = jax.nn.softmax(sim2, axis=2)
    att_v1 = jnp.einsum('blm,bmd->bld', v1_v2_attn, v2)
    att_v2 = jnp.einsum('blm,bld->bmd', v2_v1_attn, v1)
    att_v1 = jnp.where(v1_mask[:, :, None], 0.0, att_v1)
    att_v2 = jnp.where(v2_mask[:, :, None], 0.0, att_v2)
    return att_v1, att_v2


if __name__ == "__main__":
    # Small shapes consistent with the module: two padded sequences per batch.
    B, L1, L2, D = 2, 16, 24, 32

    key = jax.random.PRNGKey(0)
    k1, k2 = jax.random.split(key, 2)
    v1 = jax.random.normal(k1, (B, L1, D), dtype=jnp.float32)
    v2 = jax.random.normal(k2, (B, L2, D), dtype=jnp.float32)

    # Boolean masks: True marks padded positions (MatchZoo convention).
    len1 = jnp.array([L1, L1 - 5], dtype=jnp.int32)
    len2 = jnp.array([L2 - 7, L2], dtype=jnp.int32)
    v1_mask = jnp.arange(L1)[None, :] >= len1[:, None]    # (B, L1) bool
    v2_mask = jnp.arange(L2)[None, :] >= len2[:, None]    # (B, L2) bool

    av1, av2 = bidirectional_attention(v1, v1_mask, v2, v2_mask)
    av1, av2 = jax.block_until_ready((av1, av2))
    assert av1.shape == (B, L1, D), av1.shape
    assert av2.shape == (B, L2, D), av2.shape

    r1, r2 = reference_forward(v1, v1_mask, v2, v2_mask)
    r1, r2 = jax.block_until_ready((r1, r2))

    # bf16 matmul operands + approx reciprocal => tolerance covers bf16
    # rounding of the similarity logits (~1e-2 relative on the outputs).
    ok1 = bool(jnp.allclose(av1, r1, atol=5e-2, rtol=5e-2))
    ok2 = bool(jnp.allclose(av2, r2, atol=5e-2, rtol=5e-2))
    if not (ok1 and ok2):
        err1 = float(jnp.max(jnp.abs(av1 - r1)))
        err2 = float(jnp.max(jnp.abs(av2 - r2)))
        raise AssertionError(
            f"Pallas output does not match reference: max err {err1:.4e} / {err2:.4e}")

    print("KERNEL_OK")
</pallas_src>

<mosaic_0001>
module attributes {stable_mosaic.version = 11 : i64} {
  func.func @_bidir_attn_kernel(%arg0: i32, %arg1: memref<1x16x128xbf16, #tpu.memory_space<vmem>>, %arg2: memref<1x24x128xbf16, #tpu.memory_space<vmem>>, %arg3: memref<1x1x16xi8, #tpu.memory_space<vmem>>, %arg4: memref<1x16x1xi8, #tpu.memory_space<vmem>>, %arg5: memref<1x1x24xi8, #tpu.memory_space<vmem>>, %arg6: memref<1x24x1xi8, #tpu.memory_space<vmem>>, %arg7: memref<1x16x128xf32, #tpu.memory_space<vmem>>, %arg8: memref<1x24x128xf32, #tpu.memory_space<vmem>>) attributes {dimension_semantics = [#tpu.dimension_semantics<parallel>], iteration_bounds = array<i64: 2>, scalar_prefetch = 0 : i64, scratch_operands = 0 : i64, tpu.core_type = #tpu.core_type<tc>, window_params = [{transform_indices = @transform_0, window_bounds = array<i64: 1, 16, 128>}, {transform_indices = @transform_1, window_bounds = array<i64: 1, 24, 128>}, {transform_indices = @transform_2, window_bounds = array<i64: 1, 1, 16>}, {transform_indices = @transform_3, window_bounds = array<i64: 1, 16, 1>}, {transform_indices = @transform_4, window_bounds = array<i64: 1, 1, 24>}, {transform_indices = @transform_5, window_bounds = array<i64: 1, 24, 1>}, {transform_indices = @transform_6, window_bounds = array<i64: 1, 16, 128>}, {transform_indices = @transform_7, window_bounds = array<i64: 1, 24, 128>}]} {
    %c0 = arith.constant 0 : index
    %c0_0 = arith.constant 0 : index
    %c0_1 = arith.constant 0 : index
    %0 = vector.load %arg1[%c0, %c0_0, %c0_1] : memref<1x16x128xbf16, #tpu.memory_space<vmem>>, vector<1x16x128xbf16>
    %c0_2 = arith.constant 0 : index
    %c0_3 = arith.constant 0 : index
    %c0_4 = arith.constant 0 : index
    %1 = vector.load %arg2[%c0_2, %c0_3, %c0_4] : memref<1x24x128xbf16, #tpu.memory_space<vmem>>, vector<1x24x128xbf16>
    "tpu.trace_start"() <{level = 10 : i32, message = "bld,bmd->blm"}> : () -> ()
    %cst = arith.constant dense<0.000000e+00> : vector<1x16x24xf32>
    %2 = tpu.matmul %0, %1, %cst {dimension_numbers = #tpu.dot_dimension_numbers<[2], [2], [1], [1], [0, 0, 0, 1, 1, 1], [0], [0]>} : vector<1x16x128xbf16>, vector<1x24x128xbf16>, vector<1x16x24xf32> -> vector<1x16x24xf32>
    "tpu.trace_stop"() : () -> ()
    %c0_5 = arith.constant 0 : index
    %c0_6 = arith.constant 0 : index
    %c0_7 = arith.constant 0 : index
    %3 = vector.load %arg5[%c0_5, %c0_6, %c0_7] : memref<1x1x24xi8, #tpu.memory_space<vmem>>, vector<1x1x24xi8>
    %c0_i8 = arith.constant 0 : i8
    %4 = vector.broadcast %c0_i8 : i8 to vector<1x1x24xi8>
    %5 = arith.cmpi ne, %3, %4 : vector<1x1x24xi8>
    %cst_8 = arith.constant -1.000000e-07 : f32
    %6 = vector.shape_cast %5 : vector<1x1x24xi1> to vector<1x1x24xi1>
    %7 = vector.broadcast %6 : vector<1x1x24xi1> to vector<1x16x24xi1>
    %8 = vector.broadcast %cst_8 : f32 to vector<1x16x24xf32>
    %9 = arith.select %7, %8, %2 : vector<1x16x24xi1>, vector<1x16x24xf32>
    %cst_9 = arith.constant dense<0xFF800000> : vector<1x16xf32>
    %10 = vector.multi_reduction <maximumf>, %9, %cst_9 [2] : vector<1x16x24xf32> to vector<1x16xf32>
    %11 = vector.shape_cast %10 : vector<1x16xf32> to vector<1x16x1xf32>
    %12 = vector.broadcast %11 : vector<1x16x1xf32> to vector<1x16x24xf32>
    %13 = arith.subf %9, %12 : vector<1x16x24xf32>
    %14 = math.exp %13 : vector<1x16x24xf32>
    %cst_10 = arith.constant dense<0.000000e+00> : vector<1x16xf32>
    %15 = vector.multi_reduction <add>, %14, %cst_10 [2] : vector<1x16x24xf32> to vector<1x16xf32>
    %16 = vector.shape_cast %15 : vector<1x16xf32> to vector<1x16x1xf32>
    %17 = tpu.reciprocal %16 {approx = true} : vector<1x16x1xf32> -> vector<1x16x1xf32>
    %18 = arith.truncf %14 : vector<1x16x24xf32> to vector<1x16x24xbf16>
    "tpu.trace_start"() <{level = 10 : i32, message = "blm,bmd->bld"}> : () -> ()
    %cst_11 = arith.constant dense<0.000000e+00> : vector<1x16x128xf32>
    %19 = tpu.matmul %18, %1, %cst_11 {dimension_numbers = #tpu.dot_dimension_numbers<[2], [1], [1], [2], [0, 0, 0, 1, 1, 2], [0], [0]>} : vector<1x16x24xbf16>, vector<1x24x128xbf16>, vector<1x16x128xf32> -> vector<1x16x128xf32>
    "tpu.trace_stop"() : () -> ()
    %20 = vector.broadcast %17 : vector<1x16x1xf32> to vector<1x16x128xf32>
    %21 = arith.mulf %19, %20 : vector<1x16x128xf32>
    %c0_12 = arith.constant 0 : index
    %c0_13 = arith.constant 0 : index
    %c0_14 = arith.constant 0 : index
    %22 = vector.load %arg4[%c0_12, %c0_13, %c0_14] : memref<1x16x1xi8, #tpu.memory_space<vmem>>, vector<1x16x1xi8>
    %c0_i8_15 = arith.constant 0 : i8
    %23 = vector.broadcast %c0_i8_15 : i8 to vector<1x16x1xi8>
    %24 = arith.cmpi ne, %22, %23 : vector<1x16x1xi8>
    %cst_16 = arith.constant 0.000000e+00 : f32
    %25 = vector.shape_cast %24 : vector<1x16x1xi1> to vector<1x16x1xi1>
    %26 = vector.broadcast %25 : vector<1x16x1xi1> to vector<1x16x128xi1>
    %27 = vector.broadcast %cst_16 : f32 to vector<1x16x128xf32>
    %28 = arith.select %26, %27, %21 : vector<1x16x128xi1>, vector<1x16x128xf32>
    %c0_17 = arith.constant 0 : index
    %c0_18 = arith.constant 0 : index
    %c0_19 = arith.constant 0 : index
    %29 = vector.load %arg7[%c0_17, %c0_18, %c0_19] : memref<1x16x128xf32, #tpu.memory_space<vmem>>, vector<1x16x128xf32>
    tpu.vector_store %arg7[%c0_17, %c0_18, %c0_19], %28 {strides = array<i32>} : memref<1x16x128xf32, #tpu.memory_space<vmem>>, vector<1x16x128xf32>,
    "tpu.trace_start"() <{level = 10 : i32, message = "bmd,bld->bml"}> : () -> ()
    %cst_20 = arith.constant dense<0.000000e+00> : vector<1x24x16xf32>
    %30 = tpu.matmul %1, %0, %cst_20 {dimension_numbers = #tpu.dot_dimension_numbers<[2], [2], [1], [1], [0, 0, 0, 1, 1, 1], [0], [0]>} : vector<1x24x128xbf16>, vector<1x16x128xbf16>, vector<1x24x16xf32> -> vector<1x24x16xf32>
    "tpu.trace_stop"() : () -> ()
    %c0_21 = arith.constant 0 : index
    %c0_22 = arith.constant 0 : index
    %c0_23 = arith.constant 0 : index
    %31 = vector.load %arg3[%c0_21, %c0_22, %c0_23] : memref<1x1x16xi8, #tpu.memory_space<vmem>>, vector<1x1x16xi8>
    %c0_i8_24 = arith.constant 0 : i8
    %32 = vector.broadcast %c0_i8_24 : i8 to vector<1x1x16xi8>
    %33 = arith.cmpi ne, %31, %32 : vector<1x1x16xi8>
    %cst_25 = arith.constant -1.000000e-07 : f32
    %34 = vector.shape_cast %33 : vector<1x1x16xi1> to vector<1x1x16xi1>
    %35 = vector.broadcast %34 : vector<1x1x16xi1> to vector<1x24x16xi1>
    %36 = vector.broadcast %cst_25 : f32 to vector<1x24x16xf32>
    %37 = arith.select %35, %36, %30 : vector<1x24x16xi1>, vector<1x24x16xf32>
    %cst_26 = arith.constant dense<0xFF800000> : vector<1x24xf32>
    %38 = vector.multi_reduction <maximumf>, %37, %cst_26 [2] : vector<1x24x16xf32> to vector<1x24xf32>
    %39 = vector.shape_cast %38 : vector<1x24xf32> to vector<1x24x1xf32>
    %40 = vector.broadcast %39 : vector<1x24x1xf32> to vector<1x24x16xf32>
    %41 = arith.subf %37, %40 : vector<1x24x16xf32>
    %42 = math.exp %41 : vector<1x24x16xf32>
    %cst_27 = arith.constant dense<0.000000e+00> : vector<1x24xf32>
    %43 = vector.multi_reduction <add>, %42, %cst_27 [2] : vector<1x24x16xf32> to vector<1x24xf32>
    %44 = vector.shape_cast %43 : vector<1x24xf32> to vector<1x24x1xf32>
    %45 = tpu.reciprocal %44 {approx = true} : vector<1x24x1xf32> -> vector<1x24x1xf32>
    %46 = arith.truncf %42 : vector<1x24x16xf32> to vector<1x24x16xbf16>
    "tpu.trace_start"() <{level = 10 : i32, message = "bml,bld->bmd"}> : () -> ()
    %cst_28 = arith.constant dense<0.000000e+00> : vector<1x24x128xf32>
    %47 = tpu.matmul %46, %0, %cst_28 {dimension_numbers = #tpu.dot_dimension_numbers<[2], [1], [1], [2], [0, 0, 0, 1, 1, 2], [0], [0]>} : vector<1x24x16xbf16>, vector<1x16x128xbf16>, vector<1x24x128xf32> -> vector<1x24x128xf32>
    "tpu.trace_stop"() : () -> ()
    %48 = vector.broadcast %45 : vector<1x24x1xf32> to vector<1x24x128xf32>
    %49 = arith.mulf %47, %48 : vector<1x24x128xf32>
    %c0_29 = arith.constant 0 : index
    %c0_30 = arith.constant 0 : index
    %c0_31 = arith.constant 0 : index
    %50 = vector.load %arg6[%c0_29, %c0_30, %c0_31] : memref<1x24x1xi8, #tpu.memory_space<vmem>>, vector<1x24x1xi8>
    %c0_i8_32 = arith.constant 0 : i8
    %51 = vector.broadcast %c0_i8_32 : i8 to vector<1x24x1xi8>
    %52 = arith.cmpi ne, %50, %51 : vector<1x24x1xi8>
    %cst_33 = arith.constant 0.000000e+00 : f32
    %53 = vector.shape_cast %52 : vector<1x24x1xi1> to vector<1x24x1xi1>
    %54 = vector.broadcast %53 : vector<1x24x1xi1> to vector<1x24x128xi1>
    %55 = vector.broadcast %cst_33 : f32 to vector<1x24x128xf32>
    %56 = arith.select %54, %55, %49 : vector<1x24x128xi1>, vector<1x24x128xf32>
    %c0_34 = arith.constant 0 : index
    %c0_35 = arith.constant 0 : index
    %c0_36 = arith.constant 0 : index
    %57 = vector.load %arg8[%c0_34, %c0_35, %c0_36] : memref<1x24x128xf32, #tpu.memory_space<vmem>>, vector<1x24x128xf32>
    tpu.vector_store %arg8[%c0_34, %c0_35, %c0_36], %56 {strides = array<i32>} : memref<1x24x128xf32, #tpu.memory_space<vmem>>, vector<1x24x128xf32>,
    return
  }
  func.func @transform_0(%arg0: i32) -> (i32, i32, i32) {
    %c0_i32 = arith.constant 0 : i32
    %c0_i32_0 = arith.constant 0 : i32
    %c0_i32_1 = arith.constant 0 : i32
    return %arg0, %c0_i32, %c0_i32_0 : i32, i32, i32
  }
  func.func @transform_1(%arg0: i32) -> (i32, i32, i32) {
    %c0_i32 = arith.constant 0 : i32
    %c0_i32_0 = arith.constant 0 : i32
    %c0_i32_1 = arith.constant 0 : i32
    return %arg0, %c0_i32, %c0_i32_0 : i32, i32, i32
  }
  func.func @transform_2(%arg0: i32) -> (i32, i32, i32) {
    %c0_i32 = arith.constant 0 : i32
    %c0_i32_0 = arith.constant 0 : i32
    %c0_i32_1 = arith.constant 0 : i32
    return %arg0, %c0_i32, %c0_i32_0 : i32, i32, i32
  }
  func.func @transform_3(%arg0: i32) -> (i32, i32, i32) {
    %c0_i32 = arith.constant 0 : i32
    %c0_i32_0 = arith.constant 0 : i32
    %c0_i32_1 = arith.constant 0 : i32
    return %arg0, %c0_i32, %c0_i32_0 : i32, i32, i32
  }
  func.func @transform_4(%arg0: i32) -> (i32, i32, i32) {
    %c0_i32 = arith.constant 0 : i32
    %c0_i32_0 = arith.constant 0 : i32
    %c0_i32_1 = arith.constant 0 : i32
    return %arg0, %c0_i32, %c0_i32_0 : i32, i32, i32
  }
  func.func @transform_5(%arg0: i32) -> (i32, i32, i32) {
    %c0_i32 = arith.constant 0 : i32
    %c0_i32_0 = arith.constant 0 : i32
    %c0_i32_1 = arith.constant 0 : i32
    return %arg0, %c0_i32, %c0_i32_0 : i32, i32, i32
  }
  func.func @transform_6(%arg0: i32) -> (i32, i32, i32) {
    %c0_i32 = arith.constant 0 : i32
    %c0_i32_0 = arith.constant 0 : i32
    %c0_i32_1 = arith.constant 0 : i32
    return %arg0, %c0_i32, %c0_i32_0 : i32, i32, i32
  }
  func.func @transform_7(%arg0: i32) -> (i32, i32, i32) {
    %c0_i32 = arith.constant 0 : i32
    %c0_i32_0 = arith.constant 0 : i32
    %c0_i32_1 = arith.constant 0 : i32
    return %arg0, %c0_i32, %c0_i32_0 : i32, i32, i32
  }
}

</mosaic_0001>

<bundles_post_ra>
// kernel: tpu_custom_call.1
= control target key start
LH: loop header
LB: loop body
LE: loop exit
PB: predicated region body
PF: predicated region fallthrough
CT: control target
= control target key end

     0   :  { %13 = vsyncpa [#allocation3], 0  ;;  %s1548_s0 = inlined_call_operand.hbm [shape: bf16[2,16,128], index: 0, kind: input, shape index: {}]   ;;  %s1549_s1 = inlined_call_operand.vmem [shape: bf16[2,24,128], index: 1, kind: input, shape index: {}]   ;;  %s1550_s2 = inlined_call_operand.vmem [shape: s8[2,1,16], index: 2, kind: input, shape index: {}]   ;;  %s1551_s3 = inlined_call_operand.vmem [shape: s8[2,16,1], index: 3, kind: input, shape index: {}]   ;;  %s1552_s4 = inlined_call_operand.vmem [shape: s8[2,1,24], index: 4, kind: input, shape index: {}]   ;;  %s1553_s5 = inlined_call_operand.vmem [shape: s8[2,24,1], index: 5, kind: input, shape index: {}]   ;;  %s1554_s6 = inlined_call_operand.hbm [shape: f32[2,16,128], index: 6, kind: output, shape index: {0}]   ;;  %s1555_s7 = inlined_call_operand.hbm [shape: f32[2,24,128], index: 7, kind: output, shape index: {1}]  }
   0x1   :  { %15 = vsyncpa [#allocation3 + $0x1], 0 }
   0x2   :  { %16 = vsyncpa [#allocation4], 0 }
   0x3   :  { %18 = vsyncpa [#allocation4 + $0x1], 0 }
   0x4   :  { %19 = vsyncpa [#allocation7], 0 }
   0x5   :  { %21 = vsyncpa [#allocation7 + $0x1], 0  ;;  %s1287_s24 = smov 0   ;;  %s1289_s25 = smov 0  }
   0x6   :  { %s1291_s26 = smov 0   ;;  %s1293_s27 = smov 0  }
   0x7 LB: > { %s1308_s28 = sadd.s32 4294967295, %s1235_s27   ;;  %s952_s29 = sadd.s32 4294967294, %s1235_s27   ;;  %s1235_s27 = sphi %s1293_s27, %s1568_s27   ;;  %s1231_s26 = sphi %s1291_s26, %s1567_s26   ;;  %s1227_s25 = sphi %s1289_s25, %s1566_s25   ;;  %s1223_s24 = sphi %s1287_s24, %s1565_s24  }
   0x8   : > { %s1312_s30 = sadd.s32 1, %s1235_s27   ;;  %s34_s8 = sadd.s32 1, %s1231_s26 }
   0x9   : > { %s31_s9 = ssub.s32 %s1235_s27, %s1312_s30  ;;  %p41_p0 = scmp.ne.s32.totalorder %s1231_s26, %s1227_s25 }
   0xa   : > { %p32_p1 = scmp.eq.s32.totalorder %s31_s9, 0  ;;  %p42_p2 = scmp.eq.s32.totalorder %s1235_s27, 0 }
   0xb   : > { %p47_p3 = scmp.ne.s32.totalorder %s1227_s25, %s1223_s24  ;;  %p48_p4 = scmp.eq.s32.totalorder %s1308_s28, 0 }
   0xc   : > { %s1324_s10 = scalar_select %p32_p1, %s1231_s26, %s34_s8  }
   0xd   : > { %p1326_p5 = por %p42_p2, %p41_p0  ;;  %p1330_p6 = por %p48_p4, %p47_p3 }
   0xe   : > { %p201_p7 = scmp.eq.s32.totalorder %s1308_s28, 1  ;;  %p207_p8 = scmp.eq.s32.totalorder %s952_s29, 1 }
   0xf   : > { %p1041_p10 = scmp.lt.s32.totalorder %s1235_s27, 2  ;;  %s253_s15 = sand.u32 1, %s1231_s26  }
  0x10   : > { %p1337_p11 = por %p201_p7, %p41_p0  ;;  %p1341_p12 = por %p207_p8, %p47_p3 }
  0x11   : > { %s977_s16 = sshll.u32 %s1235_s27, 7  ;;  %s955_s17 = sshll.u32 %s253_s15, 3 }
  0x12   : > { %s1559_s13 = scalar_select %p1337_p11, 1, 0 }
  0x13   : > { %s1560_s14 = scalar_select %p1341_p12, 1, 0 }
  0x14   : > { %s1350_s20 = scalar_lea.hbm %s1548_s0, %s977_s16  ;;  %s257_s21 = scalar_lea.vmem [#allocation2], %s955_s17 }
  0x15   : > { %s264_s22 = sshll.u32 %s257_s21, 4  ;;  %p1354_p13 = pnand %p1041_p10, %p1326_p5  ;;  %s1358_s22 = int_to_ptr.vmem [resolvable:$true] %s264_s22 }
  0x16   : > { %s1360_s29 = scalar_lea.sflag [#allocation3], %s253_s15  ;;  %s1107_s8 = scalar_lea.hbm %s1350_s20, 128 }
  0x17   : > { %p1108_p0 = scmp.ne.s32.totalorder %s1350_s20, %s1107_s8  ;;  %p1109_p1 = pneg %p1354_p13 }
  0x18   : > { %s1112_s16 = scalar_lea.hbm %s1548_s0, 256  ;;  %p1113_p4 = scmp.lt.u32.totalorder %s1350_s20, %s1548_s0 }
  0x19   : > { %p1110_p2 = pnand %p1109_p1, %p1108_p0  ;;  %p1114_p5 = scmp.lt.u32.totalorder %s1112_s16, %s1107_s8 }
  0x1a   : > { %p1116_p8 = scmp.lt.u32.totalorder %s1107_s8, %s1350_s20 }
  0x1b   : > { %p1111_p3 = pneg %p1110_p2  ;;  %p1115_p7 = por %p1114_p5, %p1113_p4 }
  0x1d   : > { %p1117_p10 = por %p1116_p8, %p1115_p7 }
  0x1f   : > { %p1118_p9 = pnand %p1117_p10, %p1111_p3 }
  0x21   : > { %1121 = shalt.err (!%p1118_p9)
}
  0x22   : > { %s1122_s15 = scalar_lea.vmem %s1358_s22, 128  ;;  %s1237_s19 = smov [#allocation2]  }
  0x23   : > { %p1123_p0 = scmp.ne.s32.totalorder %s1358_s22, %s1122_s15  ;;  %s1127_s21 = sshll.u32 %s1237_s19, 4  ;;  %s1128_s21 = int_to_ptr.vmem [resolvable:$false] %s1127_s21 }
  0x24   : > { %s1129_s9 = scalar_lea.vmem %s1128_s21, 256  ;;  %p1130_p11 = scmp.lt.s32.totalorder %s1358_s22, %s1128_s21 }
  0x25   : > { %p1125_p2 = pnand %p1123_p0, %p1109_p1  ;;  %p1131_p4 = scmp.lt.s32.totalorder %s1129_s9, %s1122_s15 }
  0x27   : > { %p1126_p12 = pneg %p1125_p2  ;;  %p1132_p5 = por %p1131_p4, %p1130_p11 }
  0x29   : > { %p1133_p7 = pnand %p1132_p5, %p1126_p12 }
  0x2b   : > { %1136 = shalt.err (!%p1133_p7)
}
  0x2c   : > { %s1238_s8 = smov 64   ;;  %s1239_s11 = smov 4  }
  0x2d   : > { %1033 = dma.hbm_to_vmem [thread:$0]  (!%p1354_p13), %s1350_s20, 128, %s1358_s22, %s1360_s29, %s1238_s8, %s1238_s8, %s1239_s11  }
  0x2e   : > { %p958_p9 = scmp.ge.s32.totalorder %s1235_s27, 1  ;;  %p308_p1 = scmp.lt.s32.totalorder %s1235_s27, 3 }
  0x30   : > { %p309_p3 = pnand %p958_p9, %p308_p1 }
  0x31   : > { %s1391_s16 = sand.u32 (!%p309_p3), 1, %s1227_s25  }
  0x32   : > { %312 = sbr.rel (%p309_p3) target bundleno = 1077 (0x435), region = 44  ;;  %s959_s17 = sshll.u32 (!%p309_p3), %s1391_s16, 3 }
  0x33   : > { %s315_s18 = scalar_lea.sflag (!%p309_p3), [#allocation3], %s1391_s16  ;;  %s318_s15 = scalar_lea.vmem (!%p309_p3), [#allocation2], %s959_s17 }
  0x39   : > { %1210 = dma.done.wait (%p1330_p6), %s315_s18, 128  }
  0x3a   : > { %1212 = vsyncadd (%p1330_p6), %s315_s18, 4294967168  ;;  %p375_p11 = scmp.lt.s32.totalorder %s1308_s28, 1  ;;  %v1240_v0 = vmov 0.0   ;;  %vm1241_vm0 = vmmov 0   ;;  %v1086_v3 = vld [vmem:[%s318_s15] sm:$0xff]   ;;  %v1242_v4 = vmov 0   ;;  %v467_v7 = vlaneseq }
  0x3b   : > { %992 = vmatprep.subr.bf16.mxu0 %v1240_v0  ;;  %996 = vmatprep.mubr.msk.bf16.mxu0 %vm1241_vm0, %v1240_v0  ;;  %vm474_vm4 = vcmask 195584   ;;  %vm499_vm5 = vcmask 1043456   ;;  %vm632_vm9 = vcmask 130048   ;;  %s979_s11 = sshll.u32 %s1308_s28, 8  ;;  %p1562_p12 = scmp.ne.s32.totalorder %s1559_s13, 0 }
  0x3c   : > { %s1401_s20 = scalar_select %p375_p11, %s1308_s28, 1  ;;  %1000 = vmatprep.subr.bf16.mxu1 %v1240_v0  ;;  %1004 = vmatprep.mubr.msk.bf16.mxu1 %vm1241_vm0, %v1240_v0  ;;  %v468_v9 = vshrl.u32 %v467_v7, 7 }
  0x3d   : > { %1083 = vset.pattern.permute.xlu1 %v1242_v4  ;;  %1082 = vset.pattern.permute.xlu0 %v1242_v4  ;;  %s1465_s15 = scalar_lea.hbm %s1554_s6, %s979_s11 }
  0x3e   : > { %s1021_s22 = smul.u32 12, %s1401_s20  ;;  %s390_s9 = scalar_lea.vmem %s1552_s4, %s1401_s20  ;;  %v469_v10 = vsub.s32 0, %v468_v9 }
  0x3f   : > { %v461_v5 = vld [vmem:[%s390_s9] sm:$0x1]  ;;  %s382_s17 = scalar_lea.vmem %s1550_s2, %s1401_s20  ;;  %s978_s18 = sshll.u32 %s1401_s20, 2 }
  0x40   : > { %s379_s19 = scalar_lea.vmem %s1549_s1, %s1021_s22  ;;  %vm462_vm1 = vnez %v461_v5  ;;  %v618_v31 = vld [vmem:[%s382_s17] sm:$0x1]  ;;  %s387_s23 = scalar_lea.vmem %s1551_s3, %s978_s18 }
  0x41   : > { %v1084_v1 = vld [vmem:[%s379_s19] sm:$0xff]   ;;  %v1085_v2 = vld [vmem:[%s379_s19 + $0x8] ss:$0 sps:$4 sm:$0xff]   ;;  %v463_v6 = vsel %vm462_vm1, 16843009, %v1242_v4  ;;  %vm619_vm6 = vnez %v618_v31  ;;  %s1022_s29 = smul.u32 6, %s1401_s20 }
  0x42   : > { %993 = vmatpush3.bf16.xpose.msra.mxu0 %v1084_v1  ;;  %1001 = vmatpush3.bf16.msra.mxu1 %v1084_v1  ;;  %v464_v8 = vunpack.c.0.s8 %v463_v6  ;;  %v501_v21 = vsel %vm499_vm5, %v1085_v2, 0  ;;  %v620_v32 = vsel %vm619_vm6, 16843009, %v1242_v4  ;;  %v546_v9 = vld [vmem:[%s387_s23] sm:$0x3]  ;;  %s960_s20 = sshll.u32 %s1391_s16, 4 }
  0x43   : > { %994 = vmatprep.subr.bf16.mxu0 %v1240_v0  ;;  %1002 = vmatprep.subr.bf16.mxu1 %v1240_v0  ;;  %v621_v33 = vunpack.c.0.s8 %v620_v32  ;;  %v547_v0 = vld [vmem:[%s387_s23 + $0x2] sm:$0x3]  ;;  %s395_s21 = scalar_lea.vmem %s1553_s5, %s1022_s29  ;;  %vm548_vm12 = vnez %v546_v9  ;;  %s367_s9 = scalar_lea.vmem [#allocation5], %s960_s20 }
  0x44   : > { %vm465_vm2 = vcmp.ne.s32.totalorder %v464_v8, 0  ;;  %vm549_vm10 = vnez %v547_v0  ;;  %v722_v7 = vld [vmem:[%s395_s21] sm:$0x3]  ;;  %s777_s8 = sshll.u32 %s367_s9, 4  ;;  %s759_s22 = scalar_lea.sflag [#allocation4], %s1391_s16  ;;  %s1459_s8 = int_to_ptr.vmem [resolvable:$true] %s777_s8 }
  0x45   : > { %v466_v11 = vsel %vm465_vm2, 1, %v1242_v4  ;;  %vm622_vm7 = vcmp.ne.s32.totalorder %v621_v33, 0  ;;  %v551_v8 = vsel %vm549_vm10, 16843009, %v1242_v4  ;;  %vm725_vm11 = vnez %v722_v7  ;;  %s1137_s23 = scalar_lea.vmem %s1459_s8, 256  ;;  %s1243_s29 = smov [#allocation5]  }
  0x46   : > { %v470_v12 = vrot.slane %v466_v11, %v469_v10  ;;  %1003 = vmatpush3.bf16.msra.mxu1 %v501_v21  ;;  %v623_v34 = vsel %vm622_vm7, 1, %v1242_v4  ;;  %v553_v11 = vunpack.c.0.s8 %v551_v8  ;;  %p1138_p6 = scmp.ne.s32.totalorder %s1459_s8, %s1137_s23  ;;  %s1141_s19 = sshll.u32 %s1243_s29, 4  ;;  %s1142_s19 = int_to_ptr.vmem [resolvable:$false] %s1141_s19 }
  0x47   : > { %1008 = vmatprep.subr.bf16.mxu1 %v1086_v3  ;;  %v627_v38 = vrot.slane %v623_v34, %v469_v10  ;;  %v723_v10 = vld [vmem:[%s395_s21 + $0x2] sm:$0x3]  ;;  %s1143_s12 = scalar_lea.vmem %s1142_s19, 512  ;;  %p1144_p10 = scmp.lt.s32.totalorder %s1459_s8, %s1142_s19 }
  0x48   : > { %vm471_vm3 = vcmp.eq.s32.totalorder %v470_v12, 1  ;;  %v728_v12 = vsel %vm725_vm11, 16843009, %v1242_v4  ;;  %vm726_vm13 = vnez %v723_v10  ;;  %vm555_vm14 = vcmp.ne.s32.totalorder %v553_v11, 0  ;;  %p1139_p13 = pnand %p1138_p6, %p1562_p12  ;;  %p1145_p0 = scmp.lt.s32.totalorder %s1143_s12, %s1137_s23 }
  0x49   : > { %vm628_vm8 = vcmp.eq.s32.totalorder %v627_v38, 1 }
  0x4a   : > { %995 = vmatpush3.bf16.xpose.msra.mxu0 %v1085_v2  ;;  %p1140_p8 = pneg %p1139_p13  ;;  %p1146_p2 = por %p1145_p0, %p1144_p10 }
  0x4b   : > { %1014 = vmatprep.subr.bf16.mxu0 %v1086_v3 }
  0x4c   : > { %p1147_p4 = pnand %p1146_p2, %p1140_p8 }
  0x51   : > { %997 = vmatmul.mubr.bf16.vlgmr.msra.gmra.mrb[0].mxu0 %v1086_v3 }
  0x52   : > { %1015 = vmatpush3.bf16.msra.mxu0 %v1086_v3 }
 0x124   : > { %v454_v13 = vpop.f32.mrb[0].mxu0 }
 0x125   : > { %v472_v14 = vsel %vm471_vm3, -1e-07, %v454_v13  ;;  %v998_v15 = vpop.f32.mrb[1].mxu0  ;;  %v550_v13 = vsel %vm548_vm12, 16843009, %v1242_v4 }
 0x126   : > { %v457_v16 = vpop.f32.mrb[2].mxu0  ;;  %v475_v17 = vsel %vm474_vm4, %v472_v14, -inf  ;;  %v731_v15 = vunpack.c.0.s8 %v728_v12 }
 0x127   : > { %v473_v18 = vsel %vm471_vm3, -1e-07, %v457_v16  ;;  %476 = vmax.xlane.f32.xlu0 %v475_v17  ;;  %v999_v19 = vpop.f32.mrb[3].mxu0  ;;  %v729_v16 = vsel %vm726_vm13, 16843009, %v1242_v4  ;;  %v552_v17 = vunpack.c.0.s8 %v550_v13 }
 0x128   : > { %v478_v20 = vsel %vm474_vm4, %v473_v18, -inf  ;;  %vm734_vm0 = vcmp.ne.s32.totalorder %v731_v15, 0  ;;  %v732_v19 = vunpack.c.0.s8 %v729_v16 }
 0x129   : > { %vm554_vm1 = vcmp.ne.s32.totalorder %v552_v17, 0  ;;  %v737_v21 = vsel %vm734_vm0, 1, %v1242_v4 }
 0x12a   : > { %vm735_vm2 = vcmp.ne.s32.totalorder %v732_v19, 0 }
 0x12b   : > { %479 = vmax.xlane.f32.xlu0 %v478_v20 }
 0x1b4   : > { %v477_v22 = vpop.xlane.xlu0 %476 }
 0x1b5   : > { %v481_v23 = vsub.f32 %v472_v14, %v477_v22  ;;  %v724_v14 = vld [vmem:[%s395_s21 + $0x4] sm:$0x3] }
 0x1b6   : > { %vm727_vm15 = vnez %v724_v14 }
 0x1b7   : > { %v483_v24 = vmul.f32 1.442695, %v481_v23  ;;  %v730_v20 = vsel %vm727_vm15, 16843009, %v1242_v4  ;;  %v556_v23 = vsel %vm554_vm1, 1, %v1242_v4 }
 0x1b8   : > { %v480_v25 = vpop.xlane.xlu0 %479  ;;  %v733_v22 = vunpack.c.0.s8 %v730_v20 }
 0x1b9   : > { %v482_v26 = vsub.f32 %v473_v18, %v480_v25  ;;  %1087 = vpow2.f32 %v483_v24  ;;  %v557_v18 = vsel %vm555_vm14, 1, %v1242_v4  ;;  %v738_v24 = vsel %vm735_vm2, 1, %v1242_v4 }
 0x1ba   : > { %vm736_vm3 = vcmp.ne.s32.totalorder %v733_v22, 0 }
 0x1bb   : > { %v485_v27 = vmul.f32 1.442695, %v482_v26  ;;  %v739_v25 = vsel %vm736_vm3, 1, %v1242_v4 }
 0x1bd   : > { %1089 = vpow2.f32 %v485_v27 }
 0x1c3   : > { %v1088_v28 = vpop.eup %1087 }
 0x1c4   : > { %v487_v51 = vsel %vm474_vm4, %v1088_v28, 0.0 }
 0x1c7   : > { %v1090_v29 = vpop.eup %1089 }
 0x1c8   : > { %v495_v30 = vpack.c.bf16 %v1090_v29, %v1088_v28  ;;  %v490_v49 = vsel %vm474_vm4, %v1090_v29, 0.0 }
 0x1ca   : > { %1005 = vmatmul.mubr.msk.bf16.vlgmr.msra.gmra.mrb[0].mxu1 %vm474_vm4, %v495_v30 }
 0x1cb   : > { %1009 = vmatpush3.bf16.xpose.msra.mxu1 %v1086_v3  ;;  %1010 = vmatprep.mubr.bf16.mxu1 %v1084_v1 }
 0x1d2   : > { %1011 = vmatmul.mubr.bf16.vlgmr.msra.gmra.mrb[4].mxu1 %v1085_v2 }
 0x29d   : > { %v1424_v35 = vpop.f32.mrb[0].mxu1 }
 0x29e   : > { %v1006_v36 = vpop.f32.mrb[1].mxu1 }
 0x29f   : > { %v1426_v37 = vpop.f32.mrb[2].mxu1 }
 0x2a0   : > { %v1007_v39 = vpop.f32.mrb[3].mxu1 }
 0x2a5   : > { %v1012_v40 = vpop.f32.mrb[4].mxu1 }
 0x2a6   : > { %v631_v41 = vsel %vm628_vm8, -1e-07, %v1012_v40  ;;  %v604_v42 = vpop.f32.mrb[5].mxu1 }
 0x2a7   : > { %v629_v43 = vsel %vm628_vm8, -1e-07, %v604_v42  ;;  %v1013_v44 = vpop.f32.mrb[6].mxu1  ;;  %v639_v45 = vsel %vm632_vm9, %v631_v41, -inf }
 0x2a8   : > { %640 = vmax.xlane.f32.xlu0 %v639_v45  ;;  %v607_v46 = vpop.f32.mrb[7].mxu1  ;;  %v633_v47 = vsel %vm632_vm9, %v629_v43, -inf }
 0x2a9   : > { %v630_v48 = vsel %vm628_vm8, -1e-07, %v607_v46  ;;  %634 = vmax.xlane.f32.xlu1 %v633_v47 }
 0x2aa   : > { %v636_v50 = vsel %vm632_vm9, %v630_v48, -inf }
 0x2ac   : > { %491 = vadd.xlane.f32.xlu0 %v490_v49 }
 0x2ad   : > { %637 = vmax.xlane.f32.xlu1 %v636_v50 }
 0x2b1   : > { %488 = vadd.xlane.f32.xlu1 %v487_v51 }
 0x335   : > { %v641_v52 = vpop.xlane.xlu0 %640 }
 0x336   : > { %v644_v53 = vsub.f32 %v631_v41, %v641_v52  ;;  %v635_v54 = vpop.xlane.xlu1 %634 }
 0x337   : > { %v642_v55 = vsub.f32 %v629_v43, %v635_v54 }
 0x338   : > { %v649_v56 = vmul.f32 1.442695, %v644_v53 }
 0x339   : > { %v645_v57 = vmul.f32 1.442695, %v642_v55  ;;  %v492_v26 = vpop.xlane.xlu0 %491 }
 0x33a   : > { %1091 = vpow2.f32 %v649_v56  ;;  %v638_v58 = vpop.xlane.xlu1 %637 }
 0x33b   : > { %v643_v59 = vsub.f32 %v630_v48, %v638_v58  ;;  %1093 = vpow2.f32 %v645_v57 }
 0x33d   : > { %v647_v60 = vmul.f32 1.442695, %v643_v59 }
 0x33e   : > { %v489_v27 = vpop.xlane.xlu1 %488 }
 0x33f   : > { %1095 = vpow2.f32 %v647_v60 }
 0x340   : > { %1097 = vrcp.f32 %v492_v26 }
 0x341   : > { %1099 = vrcp.f32 %v489_v27 }
 0x344   : > { %v1092_v61 = vpop.eup %1091 }
 0x345   : > { %v657_v62 = vsel %vm632_vm9, %v1092_v61, 0.0  ;;  %v1094_v63 = vpop.eup %1093  ;;  %v664_v6 = vpack.c.bf16 %v1092_v61, %v1092_v61 }
 0x346   : > { %658 = vadd.xlane.f32.xlu1 %v657_v62  ;;  %v651_v2 = vsel %vm632_vm9, %v1094_v63, 0.0 }
 0x349   : > { %v1096_v1 = vpop.eup %1095 }
 0x34a   : > { %652 = vadd.xlane.f32.xlu1 %v651_v2  ;;  %v654_v3 = vsel %vm632_vm9, %v1096_v1, 0.0  ;;  %v663_v5 = vpack.c.bf16 %v1096_v1, %v1094_v63  ;;  %v1098_v30 = vpop.eup %1097 }
 0x34b   : > { %655 = vadd.xlane.f32.xlu0 %v654_v3  ;;  %v545_v32 = vmul.f32 %v1098_v30, %v1426_v37  ;;  %v1100_v4 = vpop.eup %1099 }
 0x34c   : > { %1016 = vmatprep.mubr.msk.bf16.mxu0 %vm632_vm9, %v663_v5  ;;  %v544_v36 = vmul.f32 %v1100_v4, %v1424_v35 }
 0x34d   : > { %1017 = vmatmul.mubr.msk.bf16.vlgmr.msra.gmra.mrb[4].mxu0 %vm632_vm9, %v664_v6 }
 0x35b   : > { %562 = vperm.xlu1 %1083, %v557_v18  }
 0x35f   : > { %741 = vperm.xlu1 %1083, %v737_v21  }
 0x361   : > { %559 = vperm.xlu0 %1082, %v556_v23  }
 0x363   : > { %744 = vperm.xlu1 %1083, %v738_v24  }
 0x367   : > { %747 = vperm.xlu1 %1083, %v739_v25  }
 0x3d3   : > { %v659_v28 = vpop.xlane.xlu1 %658 }
 0x3d7   : > { %v653_v29 = vpop.xlane.xlu1 %652 }
 0x3d8   : > { %v656_v33 = vpop.xlane.xlu0 %655 }
 0x3db   : > { %v563_v31 = vpop.permute.xlu1 %562 }
 0x3dc   : > { %vm565_vm4 = vcmp.eq.s32.totalorder %v563_v31, 1 }
 0x3dd   : > { %v567_v34 = vsel %vm565_vm4, 0.0, %v545_v32 }
 0x3de   : > { %569 = vst [vmem:[%s367_s9 + $0x8] sm:$0xff] %v567_v34 }
 0x3e0   : > { %v560_v38 = vpop.permute.xlu0 %559 }
 0x3e1   : > { %vm564_vm5 = vcmp.eq.s32.totalorder %v560_v38, 1 }
 0x3e2   : > { %v566_v37 = vsel %vm564_vm5, 0.0, %v544_v36 }
 0x3e3   : > { %568 = vst [vmem:[%s367_s9] sm:$0xff] %v566_v37 }
 0x3e4   : > { %1150 = shalt.err (!%p1147_p4)
}
 0x3e5   : > { %s1151_s21 = scalar_lea.hbm %s1465_s15, 256  ;;  %s1155_s11 = scalar_lea.hbm %s1554_s6, 512 }
 0x3e6   : > { %p1152_p5 = scmp.ne.s32.totalorder %s1465_s15, %s1151_s21  ;;  %p1156_p1 = scmp.lt.u32.totalorder %s1465_s15, %s1554_s6 }
 0x3e7   : > { %p1157_p3 = scmp.lt.u32.totalorder %s1155_s11, %s1151_s21  ;;  %p1159_p6 = scmp.lt.u32.totalorder %s1151_s21, %s1465_s15 }
 0x3e8   : > { %p1153_p7 = pnand %p1152_p5, %p1562_p12 }
 0x3e9   : > { %p1158_p11 = por %p1157_p3, %p1156_p1 }
 0x3ea   : > { %p1154_p9 = pneg %p1153_p7 }
 0x3eb   : > { %p1160_p13 = por %p1159_p6, %p1158_p11 }
 0x3ed   : > { %p1161_p8 = pnand %p1160_p13, %p1154_p9 }
 0x3ef   : > { %1164 = shalt.err (!%p1161_p8)
}
 0x3f0   : > { %s1244_s23 = smov 128   ;;  %s1245_s29 = smov 8   ;;  %v742_v35 = vpop.permute.xlu1 %741  ;;  %1101 = vrcp.f32 %v659_v28 }
 0x3f1   : > { %1026 = dma.vmem_to_hbm [thread:$0]  (%p1562_p12), %s1459_s8, 256, %s1465_s15, %s759_s22, %s1244_s23, %s1244_s23, %s1245_s29   ;;  %1103 = vrcp.f32 %v653_v29  ;;  %vm749_vm7 = vcmp.eq.s32.totalorder %v742_v35, 1 }
 0x3f2   : > { %1105 = vrcp.f32 %v656_v33  ;;  %s1020_s19 = smul.u32 24, %s1391_s16  ;;  %s764_s22 = scalar_lea.sflag [#allocation7], %s1391_s16 }
 0x3f3   : > { %s1023_s20 = smul.u32 384, %s1308_s28  ;;  %s1246_s11 = smov [#allocation6]  }
 0x3f4   : > { %v745_v39 = vpop.permute.xlu1 %744  ;;  %s374_s12 = scalar_lea.vmem [#allocation6], %s1020_s19  ;;  %s1169_s17 = sshll.u32 %s1246_s11, 4  ;;  %s1170_s17 = int_to_ptr.vmem [resolvable:$false] %s1169_s17 }
 0x3f5   : > { %s793_s21 = sshll.u32 %s374_s12, 4  ;;  %vm750_vm8 = vcmp.eq.s32.totalorder %v745_v39, 1  ;;  %s1501_s15 = scalar_lea.hbm %s1555_s7, %s1023_s20  ;;  %s1496_s21 = int_to_ptr.vmem [resolvable:$true] %s793_s21 }
 0x3f6   : > { %s1165_s9 = scalar_lea.vmem %s1496_s21, 384  ;;  %s1171_s18 = scalar_lea.vmem %s1170_s17, 768 }
 0x3f7   : > { %p1166_p10 = scmp.ne.s32.totalorder %s1496_s21, %s1165_s9  ;;  %p1172_p4 = scmp.lt.s32.totalorder %s1496_s21, %s1170_s17 }
 0x3f8   : > { %v748_v40 = vpop.permute.xlu1 %747  ;;  %p1173_p5 = scmp.lt.s32.totalorder %s1171_s18, %s1165_s9 }
 0x3f9   : > { %vm751_vm6 = vcmp.eq.s32.totalorder %v748_v40, 1  ;;  %p1167_p0 = pnand %p1166_p10, %p1562_p12 }
 0x3fa   : > { %v1102_v41 = vpop.eup %1101  ;;  %p1174_p7 = por %p1173_p5, %p1172_p4 }
 0x3fb   : > { %v1104_v43 = vpop.eup %1103  ;;  %p1168_p2 = pneg %p1167_p0 }
 0x3fc   : > { %v1106_v48 = vpop.eup %1105 }
 0x3fd   : > { %p1175_p9 = pnand %p1174_p7, %p1168_p2 }
 0x420   : > { %v1018_v42 = vpop.f32.mrb[4].mxu0 }
 0x421   : > { %v721_v44 = vmul.f32 %v1102_v41, %v1018_v42  ;;  %v705_v45 = vpop.f32.mrb[5].mxu0 }
 0x422   : > { %v719_v46 = vmul.f32 %v1104_v43, %v705_v45  ;;  %v1019_v47 = vpop.f32.mrb[6].mxu0 }
 0x423   : > { %v754_v49 = vsel %vm751_vm6, 0.0, %v721_v44  ;;  %v708_v50 = vpop.f32.mrb[7].mxu0 }
 0x424   : > { %757 = vst [vmem:[%s374_s12 + $0x10] sm:$0xff] %v754_v49  ;;  %v752_v51 = vsel %vm749_vm7, 0.0, %v719_v46  ;;  %v720_v52 = vmul.f32 %v1106_v48, %v708_v50 }
 0x425   : > { %755 = vst [vmem:[%s374_s12] sm:$0xff] %v752_v51 }
 0x426   : > { %v753_v53 = vsel %vm750_vm8, 0.0, %v720_v52 }
 0x427   : > { %756 = vst [vmem:[%s374_s12 + $0x8] sm:$0xff] %v753_v53 }
 0x428   : > { %1178 = shalt.err (!%p1175_p9)
}
 0x429   : > { %s1179_s19 = scalar_lea.hbm %s1501_s15, 384  ;;  %s1183_s28 = scalar_lea.hbm %s1555_s7, 768 }
 0x42a   : > { %p1180_p1 = scmp.ne.s32.totalorder %s1501_s15, %s1179_s19  ;;  %p1184_p6 = scmp.lt.u32.totalorder %s1501_s15, %s1555_s7 }
 0x42b   : > { %p1185_p13 = scmp.lt.u32.totalorder %s1183_s28, %s1179_s19  ;;  %p1187_p10 = scmp.lt.u32.totalorder %s1179_s19, %s1501_s15 }
 0x42c   : > { %p1181_p3 = pnand %p1180_p1, %p1562_p12 }
 0x42d   : > { %p1186_p8 = por %p1185_p13, %p1184_p6 }
 0x42e   : > { %p1182_p11 = pneg %p1181_p3 }
 0x42f   : > { %p1188_p0 = por %p1187_p10, %p1186_p8 }
 0x431   : > { %p1189_p2 = pnand %p1188_p0, %p1182_p11 }
 0x433   : > { %1192 = shalt.err (!%p1189_p2)
}
 0x434   : > { %1027 = dma.vmem_to_hbm [thread:$0]  (%p1562_p12), %s1496_s21, 384, %s1501_s15, %s764_s22, %s1244_s23, %s1244_s23, %s1245_s29  }
 0x435 PF: > { %s808_s9 = sand.u32 1, %s1223_s24   ;;  %p1563_p4 = scmp.ne.s32.totalorder %s1560_s14, 0 }
 0x436   : > { %p1564_p5 = scmp.ge.s32.totalorder %s1235_s27, 2  ;;  %s809_s17 = scalar_lea.sflag [#allocation4], %s808_s9 }
 0x438   : > { %p1035_p7 = pnand %p1564_p5, %p1563_p4 }
 0x43a   : > { %1214 = dma.done.wait (!%p1035_p7), %s809_s17, 256  }
 0x43b   : > { %1216 = vsyncadd (!%p1035_p7), %s809_s17, 4294967040  ;;  %s818_s13 = scalar_lea.sflag [#allocation7], %s808_s9 }
 0x43c   : > { %1218 = dma.done.wait (!%p1035_p7), %s818_s13, 384  }
 0x43d   : > { %1220 = vsyncadd (!%p1035_p7), %s818_s13, 4294966912  ;;  %p24_p12 = scmp.ge.s32.totalorder %s1312_s30, 4   ;;  %s1565_s24 = smov %s1227_s25 }
 0x43e   : > { %s1566_s25 = smov %s1231_s26  ;;  %s1567_s26 = smov %s1324_s10 }
 0x43f   : > { %s1568_s27 = smov %s1312_s30  ;;  %26 = sbr.rel (!%p24_p12) target bundleno = 7 (0x7), region = 121 }
 0x446   :  { %823 = vsyncpa [#allocation3], 1 }
 0x447   :  { %825 = vsyncpa [#allocation3 + $0x1], 1 }
 0x448   :  { %826 = vsyncpa [#allocation4], 1 }
 0x449   :  { %828 = vsyncpa [#allocation4 + $0x1], 1 }
 0x44a   :  { %829 = vsyncpa [#allocation7], 1 }
 0x44b   :  { %831 = vsyncpa [#allocation7 + $0x1], 1 }

</bundles_post_ra>
